<compile_context>
chip_gen: v7x
topology: tpu7x:2x2x1
jax: 0.10.0
libtpu: 0.0.40
codegen_flags: <defaults>
</compile_context>

<pallas_src>
import jax
import jax.numpy as jnp
from jax import lax
from jax.experimental import pallas as pl
from jax.experimental.pallas import tpu as pltpu

# ----------------------------- configuration --------------------------------
B, C, H, W = 2, 4, 16, 16        # batch, channels, spatial (NCHW at the API)
HID = 32                         # hidden width of the velocity net
NUM_CLASSES = 8                  # class-conditioning vocabulary
KH = KW = 3                      # conv kernel size
HW = H * W
BHW = B * HW
KKC = KH * KW * C                # im2col contraction size (36)

# packed conditioning-parameter layout (columns of the (HID, NCOLS) condw input)
NCOND = 1 + NUM_CLASSES + 1      # [wt | wy^T | bemb]  (multiplied by cvec)
COL_B1 = NCOND                   # hidden bias column
COL_B2 = NCOND + 1               # output bias column (first C rows valid)
NCOLS = NCOND + 2


def _silu(x):
    return x * (1.0 / (1.0 + jnp.exp(-x)))


# ------------------------------ Pallas kernel --------------------------------
def _velocity_net_kernel(pat_ref, w1t_ref, w2t_ref, condw_ref, cvec_ref, out_ref):
    # Conditioning embedding for ALL batch samples in one tiny matmul:
    #   [wt | wy^T | bemb] @ [t ; onehot(y) ; 1]  -> (HID, B)
    cw = condw_ref[:, 0:NCOND]                                   # (HID, NCOND)
    b1c = condw_ref[:, COL_B1:COL_B1 + 1]                        # (HID, 1)
    b2c = condw_ref[0:C, COL_B2:COL_B2 + 1]                      # (C, 1)

    pre = jnp.dot(cw, cvec_ref[...], preferred_element_type=jnp.float32)
    bias = _silu(pre) + b1c                                      # (HID, B), hoisted once

    # Replicate each sample's bias column across its H*W output columns
    # (cheap lane broadcasts + one lane-aligned concat; no relayout).
    bias_full = jnp.concatenate(
        [jnp.broadcast_to(bias[:, b:b + 1], (HID, HW)) for b in range(B)],
        axis=1)                                                  # (HID, BHW)

    # 3x3 conv as a single im2col matmul: (HID, KKC) @ (KKC, B*H*W)
    h = jnp.dot(w1t_ref[...], pat_ref[...], preferred_element_type=jnp.float32)
    h = _silu(h + bias_full)                                     # (HID, BHW)

    # 1x1 projection HID -> C: (C, HID) @ (HID, BHW); lane-dense store.
    o = jnp.dot(w2t_ref[...], h, preferred_element_type=jnp.float32) + b2c
    out_ref[...] = o.astype(out_ref.dtype)                       # (C, BHW)


def velocity_net_pallas(params, t, x_nchw, y):
    """Runs the synthetic velocity net on NCHW input via one pallas_call."""
    w1, b1, wt, wy, bemb, w2, b2 = params

    # ---- host-side layout plumbing: im2col + transposed / packed params ----
    xpad = jnp.pad(x_nchw, ((0, 0), (0, 0), (1, 1), (1, 1)))        # (B,C,H+2,W+2)
    taps = [xpad[:, :, dy:dy + H, dx:dx + W]
            for dy in range(KH) for dx in range(KW)]                # 9 x (B,C,H,W)
    pat = jnp.stack(taps, axis=0)                                   # (9,B,C,H,W)
    pat_T = jnp.transpose(pat, (0, 2, 1, 3, 4)).reshape(KKC, BHW)   # (36, 512)

    w1_T = jnp.transpose(w1.reshape(KKC, HID))                      # (HID, 36)
    w2_T = jnp.transpose(w2)                                        # (C, HID)

    onehot = jax.nn.one_hot(y, NUM_CLASSES, dtype=jnp.float32)      # (B, NC)
    cvec = jnp.concatenate(
        [t[:, None].astype(jnp.float32), onehot,
         jnp.ones((B, 1), jnp.float32)], axis=1).T                  # (NCOND, B)

    condw = jnp.concatenate(
        [wt.T, wy.T, bemb.T, b1.T,
         jnp.pad(b2.T, ((0, HID - C), (0, 0)))], axis=1)            # (HID, NCOLS)

    vmem = pl.BlockSpec(memory_space=pltpu.MemorySpace.VMEM)
    out_T = pl.pallas_call(
        _velocity_net_kernel,
        out_shape=jax.ShapeDtypeStruct((C, BHW), jnp.float32),
        in_specs=[vmem, vmem, vmem, vmem, vmem],
        out_specs=vmem,
    )(pat_T, w1_T, w2_T, condw, cvec)

    # (C, B*H*W) -> (B, C, H, W)  (PyTorch NCHW convention)
    return jnp.transpose(out_T.reshape(C, B, H, W), (1, 0, 2, 3))


# ------------------------- Rectified_Flow.forward -----------------------------
def rectified_flow_forward(params, t, x_nchw, y):
    """Mirrors Rectified_Flow.forward: expand scalar t, run net, return _pred."""
    t = jnp.asarray(t, jnp.float32)
    if t.size == 1:                                   # t.numel() == 1 branch
        t = jnp.broadcast_to(jnp.reshape(t, ()), (x_nchw.shape[0],))
    return velocity_net_pallas(params, t, x_nchw, y)
    # TODO(synk): encode/decode (odeint samplers) and training_losses RNG loop are
    # host-level control flow, not kernel work; only forward() is implemented.


# ------------------------------ pure-JAX reference ----------------------------
def velocity_net_reference(params, t, x_nchw, y):
    w1, b1, wt, wy, bemb, w2, b2 = params
    x_nhwc = jnp.transpose(x_nchw, (0, 2, 3, 1))
    emb = _silu(t[:, None] * wt[0] + wy[y] + bemb[0])
    h = lax.conv_general_dilated(x_nhwc, w1, (1, 1), 'SAME',
                                 dimension_numbers=('NHWC', 'HWIO', 'NHWC'),
                                 precision=lax.Precision.HIGHEST)
    h = _silu(h + b1[0] + emb[:, None, None, :])
    o = jnp.einsum('bhwc,cd->bhwd', h, w2,
                   precision=lax.Precision.HIGHEST) + b2[0]
    return jnp.transpose(o, (0, 3, 1, 2))             # back to NCHW


def init_params(key):
    ks = jax.random.split(key, 7)
    s = 0.1
    w1 = s * jax.random.normal(ks[0], (KH, KW, C, HID), jnp.float32)
    b1 = s * jax.random.normal(ks[1], (1, HID), jnp.float32)
    wt = s * jax.random.normal(ks[2], (1, HID), jnp.float32)
    wy = s * jax.random.normal(ks[3], (NUM_CLASSES, HID), jnp.float32)
    bemb = s * jax.random.normal(ks[4], (1, HID), jnp.float32)
    w2 = s * jax.random.normal(ks[5], (HID, C), jnp.float32)
    b2 = s * jax.random.normal(ks[6], (1, C), jnp.float32)
    return (w1, b1, wt, wy, bemb, w2, b2)


if __name__ == "__main__":
    params = init_params(jax.random.PRNGKey(42))

    key = jax.random.PRNGKey(0)
    kx, kt, ky = jax.random.split(key, 3)
    x = jax.random.normal(kx, (B, C, H, W), jnp.float32)          # NCHW, like PyTorch
    t = jax.random.uniform(kt, (B,), jnp.float32)
    y = jax.random.randint(ky, (B,), 0, NUM_CLASSES, jnp.int32)

    # forward with per-sample t
    pred = rectified_flow_forward(params, t, x, y)
    pred = jax.block_until_ready(pred)
    assert pred.shape == x.shape and pred.dtype == jnp.float32

    # exercise the scalar-t expansion branch (t.numel() == 1)
    pred_scalar_t = rectified_flow_forward(params, jnp.float32(0.5), x, y)
    jax.block_until_ready(pred_scalar_t)
    assert pred_scalar_t.shape == x.shape

    # correctness check against a pure-JAX reference
    ref = velocity_net_reference(params, t, x, y)
    assert jnp.allclose(pred, ref, atol=1e-3, rtol=1e-3), float(jnp.max(jnp.abs(pred - ref)))

    print("KERNEL_OK")
</pallas_src>

<mosaic_0001>
module attributes {stable_mosaic.version = 11 : i64} {
  func.func @_velocity_net_kernel(%arg0: memref<36x512xf32, #tpu.memory_space<vmem>>, %arg1: memref<32x36xf32, #tpu.memory_space<vmem>>, %arg2: memref<4x32xf32, #tpu.memory_space<vmem>>, %arg3: memref<32x12xf32, #tpu.memory_space<vmem>>, %arg4: memref<10x2xf32, #tpu.memory_space<vmem>>, %arg5: memref<4x512xf32, #tpu.memory_space<vmem>>) attributes {dimension_semantics = [], scalar_prefetch = 0 : i64, scratch_operands = 0 : i64, tpu.core_type = #tpu.core_type<tc>} {
    %c0 = arith.constant 0 : index
    %c0_0 = arith.constant 0 : index
    %0 = vector.load %arg3[%c0, %c0_0] : memref<32x12xf32, #tpu.memory_space<vmem>>, vector<32x10xf32>
    %c0_1 = arith.constant 0 : index
    %c10 = arith.constant 10 : index
    %1 = vector.load %arg3[%c0_1, %c10] : memref<32x12xf32, #tpu.memory_space<vmem>>, vector<32x1xf32>
    %c0_2 = arith.constant 0 : index
    %c11 = arith.constant 11 : index
    %2 = vector.load %arg3[%c0_2, %c11] : memref<32x12xf32, #tpu.memory_space<vmem>>, vector<4x1xf32>
    %c0_3 = arith.constant 0 : index
    %c0_4 = arith.constant 0 : index
    %3 = vector.load %arg4[%c0_3, %c0_4] : memref<10x2xf32, #tpu.memory_space<vmem>>, vector<10x2xf32>
    %cst = arith.constant dense<0.000000e+00> : vector<32x2xf32>
    %4 = tpu.matmul %0, %3, %cst {dimension_numbers = #tpu.dot_dimension_numbers<[1], [0], [0], [1], [0, 0, 1, 1], [], []>} : vector<32x10xf32>, vector<10x2xf32>, vector<32x2xf32> -> vector<32x2xf32>
    %cst_5 = arith.constant 0.000000e+00 : f32
    %5 = vector.broadcast %cst_5 : f32 to vector<32x2xf32>
    %6 = arith.subf %5, %4 : vector<32x2xf32>
    %7 = math.exp %6 : vector<32x2xf32>
    %cst_6 = arith.constant 1.000000e+00 : f32
    %8 = vector.broadcast %cst_6 : f32 to vector<32x2xf32>
    %9 = arith.addf %8, %7 : vector<32x2xf32>
    %cst_7 = arith.constant 1.000000e+00 : f32
    %10 = vector.broadcast %cst_7 : f32 to vector<32x2xf32>
    %11 = arith.divf %10, %9 : vector<32x2xf32>
    %12 = arith.mulf %4, %11 : vector<32x2xf32>
    %13 = vector.broadcast %1 : vector<32x1xf32> to vector<32x2xf32>
    %14 = arith.addf %12, %13 : vector<32x2xf32>
    %15 = vector.extract_strided_slice %14 {offsets = [0, 0], sizes = [32, 1], strides = [1, 1]} : vector<32x2xf32> to vector<32x1xf32>
    %16 = vector.shape_cast %15 : vector<32x1xf32> to vector<32x1xf32>
    %17 = vector.broadcast %16 : vector<32x1xf32> to vector<32x256xf32>
    %18 = vector.extract_strided_slice %14 {offsets = [0, 1], sizes = [32, 1], strides = [1, 1]} : vector<32x2xf32> to vector<32x1xf32>
    %19 = vector.shape_cast %18 : vector<32x1xf32> to vector<32x1xf32>
    %20 = vector.broadcast %19 : vector<32x1xf32> to vector<32x256xf32>
    %21 = tpu.concatenate %17, %20 in 1 : vector<32x256xf32>, vector<32x256xf32> -> vector<32x512xf32>
    %c0_8 = arith.constant 0 : index
    %c0_9 = arith.constant 0 : index
    %22 = vector.load %arg1[%c0_8, %c0_9] : memref<32x36xf32, #tpu.memory_space<vmem>>, vector<32x36xf32>
    %c0_10 = arith.constant 0 : index
    %c0_11 = arith.constant 0 : index
    %23 = vector.load %arg0[%c0_10, %c0_11] : memref<36x512xf32, #tpu.memory_space<vmem>>, vector<36x512xf32>
    %cst_12 = arith.constant dense<0.000000e+00> : vector<32x512xf32>
    %24 = tpu.matmul %22, %23, %cst_12 {dimension_numbers = #tpu.dot_dimension_numbers<[1], [0], [0], [1], [0, 0, 1, 1], [], []>} : vector<32x36xf32>, vector<36x512xf32>, vector<32x512xf32> -> vector<32x512xf32>
    %25 = arith.addf %24, %21 : vector<32x512xf32>
    %cst_13 = arith.constant 0.000000e+00 : f32
    %26 = vector.broadcast %cst_13 : f32 to vector<32x512xf32>
    %27 = arith.subf %26, %25 : vector<32x512xf32>
    %28 = math.exp %27 : vector<32x512xf32>
    %cst_14 = arith.constant 1.000000e+00 : f32
    %29 = vector.broadcast %cst_14 : f32 to vector<32x512xf32>
    %30 = arith.addf %29, %28 : vector<32x512xf32>
    %cst_15 = arith.constant 1.000000e+00 : f32
    %31 = vector.broadcast %cst_15 : f32 to vector<32x512xf32>
    %32 = arith.divf %31, %30 : vector<32x512xf32>
    %33 = arith.mulf %25, %32 : vector<32x512xf32>
    %c0_16 = arith.constant 0 : index
    %c0_17 = arith.constant 0 : index
    %34 = vector.load %arg2[%c0_16, %c0_17] : memref<4x32xf32, #tpu.memory_space<vmem>>, vector<4x32xf32>
    %cst_18 = arith.constant dense<0.000000e+00> : vector<4x512xf32>
    %35 = tpu.matmul %34, %33, %cst_18 {dimension_numbers = #tpu.dot_dimension_numbers<[1], [0], [0], [1], [0, 0, 1, 1], [], []>} : vector<4x32xf32>, vector<32x512xf32>, vector<4x512xf32> -> vector<4x512xf32>
    %36 = vector.broadcast %2 : vector<4x1xf32> to vector<4x512xf32>
    %37 = arith.addf %35, %36 : vector<4x512xf32>
    %c0_19 = arith.constant 0 : index
    %c0_20 = arith.constant 0 : index
    %38 = vector.load %arg5[%c0_19, %c0_20] : memref<4x512xf32, #tpu.memory_space<vmem>>, vector<4x512xf32>
    tpu.vector_store %arg5[%c0_19, %c0_20], %37 {strides = array<i32>} : memref<4x512xf32, #tpu.memory_space<vmem>>, vector<4x512xf32>,
    return
  }
}

</mosaic_0001>

<bundles_post_ra>
// kernel: tpu_custom_call.1
= control target key start
LH: loop header
LB: loop body
LE: loop exit
PB: predicated region body
PF: predicated region fallthrough
CT: control target
= control target key end

     0   :  { %10 = vsyncpa [#allocation3], 0  ;;  %s1188_s0 = inlined_call_operand.hbm [shape: f32[36,512], index: 0, kind: input, shape index: {}]   ;;  %s1189_s1 = inlined_call_operand.vmem [shape: f32[32,36], index: 1, kind: input, shape index: {}]   ;;  %s1190_s2 = inlined_call_operand.vmem [shape: f32[4,32], index: 2, kind: input, shape index: {}]   ;;  %s1191_s3 = inlined_call_operand.vmem [shape: f32[32,12], index: 3, kind: input, shape index: {}]   ;;  %s1192_s4 = inlined_call_operand.vmem [shape: f32[10,2], index: 4, kind: input, shape index: {}]   ;;  %s1193_s5 = inlined_call_operand.hbm [shape: f32[4,512], index: 5, kind: output, shape index: {}]  }
   0x1   :  { %11 = vsyncpa [#allocation4], 0  ;;  %s966_s18 = smov [#allocation2]   ;;  %s918_s22 = scalar_lea.hbm %s1188_s0, 2560 }
   0x2   :  { %s17_s19 = sshll.u32 %s966_s18, 4  ;;  %p919_p0 = scmp.ne.s32.totalorder %s1188_s0, %s918_s22  ;;  %s18_s19 = int_to_ptr.vmem [resolvable:$true] %s17_s19 }
   0x3   :  { %p922_p1 = scmp.lt.u32.totalorder %s918_s22, %s1188_s0 }
   0x5   :  { %p924_p2 = pnand %p922_p1, %p919_p0 }
   0x7   :  { %927 = shalt.err (!%p924_p2)
}
   0x8   :  { %s928_s27 = scalar_lea.vmem %s18_s19, 2560  ;;  %p933_p4 = scmp.lt.s32.totalorder %s18_s19, %s18_s19 }
   0x9   :  { %p929_p3 = scmp.ne.s32.totalorder %s18_s19, %s928_s27  ;;  %p934_p5 = scmp.lt.s32.totalorder %s928_s27, %s928_s27 }
   0xb   :  { %p935_p6 = por %p934_p5, %p933_p4 }
   0xd   :  { %p936_p7 = pnand %p935_p6, %p929_p3 }
   0xf   :  { %939 = shalt.err (!%p936_p7)
}
  0x10   :  { %s967_s28 = smov 512   ;;  %s968_s29 = smov 32  }
  0x11   :  { %23 = dma.hbm_to_vmem [thread:$0]  %s1188_s0, 2560, %s18_s19, [#allocation3], %s967_s28, %s967_s28, %s968_s29  }
  0x12   :  { %962 = dma.done.wait [#allocation3], 2560  }
  0x13   :  { %963 = vsyncadd [#allocation3], 4294964736  ;;  %v969_v0 = vmov 10   ;;  %v970_v1 = vmov 0.0   ;;  %vm55_vm0 = vcmask 1041408   ;;  %vm42_vm1 = vcmask 80896  }
  0x14   :  { %828 = vset.pattern.permute.xlu0 %v969_v0  ;;  %829 = vset.pattern.permute.xlu1 %v969_v0  ;;  %vm971_vm2 = vmmov 1   ;;  %v40_v3 = vld [vmem:[%s1192_s4] sm:$0xff]  ;;  %v41_v4 = vld [vmem:[%s1192_s4 + $0x8] sm:$0x3]  ;;  %v37_v7 = vld [vmem:[%s1191_s3 + $0x10] sm:$0xff]  ;;  %vm265_vm4 = vcmask 1043456  }
  0x15   :  { %342 = vmatprep.mubr.f32.mxu1 %v970_v1  ;;  %vm1019_vm3 = vmpackc.low %vm55_vm0, %vm971_vm2  ;;  %v35_v5 = vld [vmem:[%s1191_s3] sm:$0xff]  ;;  %v780_v6 = vpack.c.bf16 %v41_v4, %v40_v3  ;;  %v36_v8 = vld [vmem:[%s1191_s3 + $0x8] sm:$0xff]  ;;  %181 = vperm.xlu1 %829, %v37_v7   ;;  %vm252_vm5 = vcmask 293888   ;;  %v972_v42 = vmov 0   ;;  %v973_v43 = vmov 1   ;;  %s975_s27 = smov [#allocation5]  }
  0x16   :  { %774 = vmatprep.mubr.msk.f32.mxu0 %vm42_vm1, %v35_v5  ;;  %173 = vperm.xlu0 %828, %v35_v5   ;;  %v233_v9 = vld [vmem:[#allocation2 + $0x8] sm:$0xff]  ;;  %v235_v11 = vld [vmem:[#allocation2 + $0x18] sm:$0xff]  ;;  %v232_v15 = vld [vmem:[#allocation2] sm:$0xff]  ;;  %vm574_vm6 = vcmask 261120   ;;  %s736_s28 = sshll.u32 %s975_s27, 4  ;;  %s737_s28 = int_to_ptr.vmem [resolvable:$true] %s736_s28 }
  0x17   :  { %v237_v10 = vld [vmem:[#allocation2 + $0x28] sm:$0xff]  ;;  %782 = vmatprep.subr.msk.bf16.mxu0 %vm1019_vm3, %v780_v6  ;;  %v38_v12 = vld [vmem:[%s1191_s3 + $0x18] sm:$0xff]  ;;  %v236_v16 = vld [vmem:[#allocation2 + $0x20] sm:$0xff]  ;;  %p945_p9 = scmp.lt.s32.totalorder %s737_s28, %s737_s28 }
  0x18   :  { %v786_v13 = vpack.c.bf16 %v237_v10, %v233_v9  ;;  %v239_v14 = vld [vmem:[#allocation2 + $0x38] sm:$0xff]  ;;  %785 = vmatpush3.bf16.msk.msra.mxu0 %vm1019_vm3, %v780_v6  ;;  %v788_v18 = vpack.c.bf16 %v236_v16, %v232_v15  ;;  %v234_v19 = vld [vmem:[#allocation2 + $0x10] sm:$0xff]  ;;  %v241_v21 = vld [vmem:[#allocation2 + $0x48] sm:$0xff] }
  0x19   :  { %v794_v17 = vpack.c.bf16 %v239_v14, %v235_v11  ;;  %v238_v20 = vld [vmem:[#allocation2 + $0x30] sm:$0xff]  ;;  %v245_v23 = vld [vmem:[#allocation2 + $0x68] sm:$0xff]  ;;  %v243_v24 = vld [vmem:[#allocation2 + $0x58] sm:$0xff]  ;;  %185 = vperm.xlu1 %829, %v38_v12  }
  0x1a   :  { %177 = vperm.xlu0 %828, %v36_v8   ;;  %787 = vmatprep.subr.bf16.mxu1 %v786_v13  ;;  %v796_v22 = vpack.c.bf16 %v238_v20, %v234_v19  ;;  %v247_v25 = vld [vmem:[#allocation2 + $0x78] sm:$0xff]  ;;  %v790_v26 = vpack.c.bf16 %v245_v23, %v241_v21  ;;  %v240_v28 = vld [vmem:[#allocation2 + $0x40] sm:$0xff]  ;;  %v242_v30 = vld [vmem:[#allocation2 + $0x50] sm:$0xff] }
  0x1b   :  { %795 = vmatprep.subr.bf16.mxu0 %v794_v17  ;;  %v798_v27 = vpack.c.bf16 %v247_v25, %v243_v24  ;;  %v244_v29 = vld [vmem:[#allocation2 + $0x60] sm:$0xff]  ;;  %775 = vmatmul.mubr.msk.f32.vlgmr.msra.gmra.mrb[0].mxu0 %vm42_vm1, %v36_v8  ;;  %v246_v32 = vld [vmem:[#allocation2 + $0x70] sm:$0xff]  ;;  %v249_v34 = vld [vmem:[#allocation2 + $0x88] sm:$0xf] }
  0x1c   :  { %789 = vmatpush1.bf16.msra.mxu1 %v788_v18  ;;  %v792_v31 = vpack.c.bf16 %v244_v29, %v240_v28  ;;  %777 = vmatprep.mubr.msk.f32.mxu0 %vm42_vm1, %v37_v7  ;;  %v800_v33 = vpack.c.bf16 %v246_v32, %v242_v30  ;;  %v251_v35 = vld [vmem:[#allocation2 + $0x98] sm:$0xf]  ;;  %v248_v36 = vld [vmem:[#allocation2 + $0x80] sm:$0xf]  ;;  %v250_v37 = vld [vmem:[#allocation2 + $0x90] sm:$0xf] }
  0x1d   :  { %797 = vmatpush1.bf16.msra.mxu0 %v796_v22  ;;  %791 = vmatprep.subr.bf16.mxu1 %v790_v26  ;;  %v228_v38 = vld [vmem:[%s1189_s1] sm:$0xff]  ;;  %v229_v39 = vld [vmem:[%s1189_s1 + $0x8] sm:$0xff]  ;;  %v230_v40 = vld [vmem:[%s1189_s1 + $0x10] sm:$0xff] }
  0x1e   :  { %799 = vmatprep.subr.bf16.mxu0 %v798_v27  ;;  %v231_v41 = vld [vmem:[%s1189_s1 + $0x18] sm:$0xff]  ;;  %830 = vset.pattern.permute.xlu1 %v972_v42  ;;  %v39_v32 = vld [vmem:[%s1191_s3] sm:$0xf] }
  0x1f   :  { %778 = vmatmul.mubr.msk.f32.gmra.mrb[2].mxu0 %vm42_vm1, %v38_v12  ;;  %831 = vset.pattern.permute.xlu0 %v973_v43 }
  0x20   :  { %793 = vmatpush1.bf16.msra.mxu1 %v792_v31  ;;  %431 = vmatprep.mubr.f32.mxu0 %v970_v1 }
  0x21   :  { %801 = vmatpush1.bf16.msra.mxu0 %v800_v33  ;;  %750 = vmatprep.subr.msk.mxu1 %vm265_vm4, %v249_v34  ;;  %v974_v33 = vmov 11  }
  0x22   :  { %756 = vmatprep.subr.msk.mxu0 %vm265_vm4, %v251_v35 }
  0x24   :  { %751 = vmatpush1.msk.msra.mxu1 %vm265_vm4, %v248_v36 }
  0x25   :  { %757 = vmatpush1.msk.msra.mxu0 %vm265_vm4, %v250_v37  ;;  %752 = vmatmul.mubr.msk.f32.vlgmr.msra.gmra.mrb[0].mxu1 %vm252_vm5, %v228_v38 }
  0x26   :  { %758 = vmatmul.mubr.msk.f32.vlgmr.msra.gmra.mrb[4].mxu0 %vm252_vm5, %v228_v38  ;;  %348 = vmatprep.mubr.f32.mxu1 %v970_v1 }
  0x27   :  { %437 = vmatprep.mubr.f32.mxu0 %v970_v1 }
  0x29   :  { %753 = vmatmul.mubr.msk.f32.gmra.mrb[2].mxu1 %vm252_vm5, %v229_v39 }
  0x2a   :  { %759 = vmatmul.mubr.msk.f32.gmra.mrb[6].mxu0 %vm252_vm5, %v229_v39  ;;  %354 = vmatprep.mubr.f32.mxu1 %v970_v1 }
  0x2b   :  { %443 = vmatprep.mubr.f32.mxu0 %v970_v1 }
  0x2d   :  { %754 = vmatmul.mubr.msk.f32.gmra.mrb[4].mxu1 %vm252_vm5, %v230_v40 }
  0x2e   :  { %360 = vmatprep.mubr.f32.mxu1 %v970_v1  ;;  %760 = vmatmul.mubr.msk.f32.gmra.mrb[8].mxu0 %vm252_vm5, %v230_v40 }
  0x2f   :  { %449 = vmatprep.mubr.f32.mxu0 %v970_v1 }
  0x31   :  { %755 = vmatmul.mubr.msk.f32.gmra.mrb[6].mxu1 %vm252_vm5, %v231_v41 }
  0x32   :  { %761 = vmatmul.mubr.msk.f32.gmra.mrb[10].mxu0 %vm252_vm5, %v231_v41  ;;  %642 = vmatprep.mubr.f32.mxu1 %v970_v1 }
  0x33   :  { %713 = vmatprep.mubr.f32.mxu0 %v970_v1 }
  0x94   :  { %v182_v14 = vpop.permute.xlu1 %181 }
  0x95   :  { %v174_v7 = vpop.permute.xlu0 %173 }
  0x98   :  { %v186_v21 = vpop.permute.xlu1 %185 }
  0x99   :  { %v178_v11 = vpop.permute.xlu0 %177 }
  0xee   :  { %v776_v44 = vpop.f32.mrb[0].mxu0 }
  0xef   :  { %v145_v45 = vsub.f32 0.0, %v776_v44  ;;  %v125_v46 = vpop.f32.mrb[1].mxu0 }
  0xf0   :  { %v144_v47 = vsub.f32 0.0, %v125_v46 }
  0xf1   :  { %v150_v48 = vmul.f32 1.442695, %v145_v45 }
  0xf2   :  { %v148_v49 = vmul.f32 1.442695, %v144_v47  ;;  %v779_v50 = vpop.f32.mrb[2].mxu0 }
  0xf3   :  { %838 = vpow2.f32 %v150_v48  ;;  %v147_v51 = vsub.f32 0.0, %v779_v50  ;;  %v135_v52 = vpop.f32.mrb[3].mxu0 }
  0xf4   :  { %840 = vpow2.f32 %v148_v49  ;;  %v146_v53 = vsub.f32 0.0, %v135_v52 }
  0xf5   :  { %v154_v54 = vmul.f32 1.442695, %v147_v51 }
  0xf6   :  { %v152_v55 = vmul.f32 1.442695, %v146_v53 }
  0xf7   :  { %842 = vpow2.f32 %v154_v54 }
  0xf8   :  { %v1079_v56 = vpop.f32.mrb[0].mxu1  ;;  %844 = vpow2.f32 %v152_v55 }
  0xf9   :  { %v1081_v57 = vpop.f32.mrb[4].mxu0  ;;  %v1083_v58 = vpop.f32.mrb[1].mxu1 }
  0xfa   :  { %v1085_v59 = vpop.f32.mrb[5].mxu0 }
  0xfc   :  { %v350_v60 = vpop.f32.mrb[2].mxu1 }
  0xfd   :  { %v439_v61 = vpop.f32.mrb[6].mxu0  ;;  %v352_v62 = vpop.f32.mrb[3].mxu1 }
  0xfe   :  { %v839_v63 = vpop.eup %838  ;;  %v441_v17 = vpop.f32.mrb[7].mxu0 }
  0xff   :  { %v841_v0 = vpop.eup %840  ;;  %v157_v1 = vadd.f32 1.0, %v839_v63 }
 0x100   :  { %v156_v2 = vadd.f32 1.0, %v841_v0  ;;  %v1089_v24 = vpop.f32.mrb[4].mxu1 }
 0x101   :  { %846 = vrcp.f32 %v157_v1  ;;  %v843_v3 = vpop.eup %842  ;;  %v1091_v25 = vpop.f32.mrb[5].mxu1 }
 0x102   :  { %848 = vrcp.f32 %v156_v2  ;;  %v845_v4 = vpop.eup %844  ;;  %v159_v5 = vadd.f32 1.0, %v843_v3  ;;  %v445_v27 = vpop.f32.mrb[8].mxu0 }
 0x103   :  { %v158_v6 = vadd.f32 1.0, %v845_v4  ;;  %v447_v29 = vpop.f32.mrb[9].mxu0 }
 0x104   :  { %850 = vrcp.f32 %v159_v5  ;;  %v362_v26 = vpop.f32.mrb[6].mxu1 }
 0x105   :  { %852 = vrcp.f32 %v158_v6  ;;  %v364_v28 = vpop.f32.mrb[7].mxu1  ;;  %v1094_v30 = vpop.f32.mrb[10].mxu0 }
 0x106   :  { %v1096_v31 = vpop.f32.mrb[11].mxu0 }
 0x10b   :  { %v847_v8 = vpop.eup %846 }
 0x10c   :  { %v849_v9 = vpop.eup %848  ;;  %v169_v10 = vmul.f32 %v847_v8, %v776_v44 }
 0x10d   :  { %v168_v13 = vmul.f32 %v849_v9, %v125_v46 }
 0x10e   :  { %v189_v12 = vadd.f32 %v178_v11, %v169_v10  ;;  %v851_v15 = vpop.eup %850 }
 0x10f   :  { %v853_v16 = vpop.eup %852  ;;  %v188_v18 = vadd.f32 %v174_v7, %v168_v13  ;;  %v171_v19 = vmul.f32 %v851_v15, %v779_v50 }
 0x110   :  { %217 = vperm.xlu0 %831, %v189_v12   ;;  %199 = vperm.xlu1 %830, %v189_v12   ;;  %v170_v20 = vmul.f32 %v853_v16, %v135_v52 }
 0x111   :  { %v191_v23 = vadd.f32 %v186_v21, %v171_v19 }
 0x112   :  { %v190_v22 = vadd.f32 %v182_v14, %v170_v20 }
 0x114   :  { %832 = vset.pattern.permute.xlu0 %v972_v42  ;;  %833 = vset.pattern.permute.xlu1 %v973_v43 }
 0x115   :  { %213 = vperm.xlu1 %833, %v188_v18   ;;  %194 = vperm.xlu0 %832, %v188_v18  }
 0x119   :  { %834 = vset.pattern.permute.xlu1 %v972_v42  ;;  %835 = vset.pattern.permute.xlu0 %v973_v43 }
 0x11a   :  { %209 = vperm.xlu1 %834, %v191_v23   ;;  %221 = vperm.xlu0 %835, %v190_v22  }
 0x11e   :  { %204 = vperm.xlu1 %834, %v190_v22   ;;  %837 = vset.pattern.permute.xlu0 %v974_v33 }
 0x11f   :  { %571 = vperm.xlu0 %837, %v39_v32  }
 0x122   :  { %836 = vset.pattern.permute.xlu1 %v973_v43 }
 0x123   :  { %225 = vperm.xlu1 %836, %v191_v23  }
 0x18f   :  { %v218_v34 = vpop.permute.xlu0 %217  ;;  %v200_v35 = vpop.permute.xlu1 %199 }
 0x190   :  { %v1101_v36 = vadd.f32 %v439_v61, %v218_v34  ;;  %v1103_v37 = vadd.f32 %v350_v60, %v200_v35  ;;  %v1105_v38 = vadd.f32 %v352_v62, %v200_v35  ;;  %v1107_v39 = vadd.f32 %v441_v17, %v218_v34 }
 0x192   :  { %v462_v40 = vsub.f32 0.0, %v1101_v36  ;;  %v460_v41 = vsub.f32 0.0, %v1103_v37  ;;  %v461_v42 = vsub.f32 0.0, %v1105_v38  ;;  %v463_v43 = vsub.f32 0.0, %v1107_v39 }
 0x194   :  { %v484_v44 = vmul.f32 1.442695, %v462_v40  ;;  %v480_v45 = vmul.f32 1.442695, %v460_v41  ;;  %v482_v46 = vmul.f32 1.442695, %v461_v42  ;;  %v214_v47 = vpop.permute.xlu1 %213  ;;  %v195_v48 = vpop.permute.xlu0 %194 }
 0x195   :  { %v486_v49 = vmul.f32 1.442695, %v463_v43  ;;  %v1114_v50 = vadd.f32 %v1081_v57, %v214_v47  ;;  %v1117_v51 = vadd.f32 %v1085_v59, %v214_v47  ;;  %v1120_v52 = vadd.f32 %v1079_v56, %v195_v48 }
 0x196   :  { %854 = vpow2.f32 %v484_v44  ;;  %v1123_v53 = vadd.f32 %v1083_v58, %v195_v48 }
 0x197   :  { %856 = vpow2.f32 %v480_v45  ;;  %v458_v54 = vsub.f32 0.0, %v1114_v50  ;;  %v459_v55 = vsub.f32 0.0, %v1117_v51  ;;  %v456_v60 = vsub.f32 0.0, %v1120_v52 }
 0x198   :  { %858 = vpow2.f32 %v482_v46  ;;  %v457_v57 = vsub.f32 0.0, %v1123_v53 }
 0x199   :  { %860 = vpow2.f32 %v486_v49  ;;  %v476_v59 = vmul.f32 1.442695, %v458_v54  ;;  %v478_v61 = vmul.f32 1.442695, %v459_v55  ;;  %v472_v62 = vmul.f32 1.442695, %v456_v60  ;;  %v210_v56 = vpop.permute.xlu1 %209  ;;  %v222_v63 = vpop.permute.xlu0 %221 }
 0x19a   :  { %v474_v0 = vmul.f32 1.442695, %v457_v57  ;;  %v1129_v1 = vadd.f32 %v362_v26, %v210_v56  ;;  %v1131_v58 = vadd.f32 %v364_v28, %v210_v56  ;;  %v1133_v2 = vadd.f32 %v445_v27, %v222_v63 }
 0x19b   :  { %862 = vpow2.f32 %v476_v59  ;;  %v1135_v3 = vadd.f32 %v447_v29, %v222_v63 }
 0x19c   :  { %864 = vpow2.f32 %v478_v61  ;;  %v468_v4 = vsub.f32 0.0, %v1129_v1  ;;  %v469_v5 = vsub.f32 0.0, %v1131_v58  ;;  %v466_v6 = vsub.f32 0.0, %v1133_v2 }
 0x19d   :  { %866 = vpow2.f32 %v472_v62  ;;  %v205_v7 = vpop.permute.xlu1 %204  ;;  %v467_v11 = vsub.f32 0.0, %v1135_v3 }
 0x19e   :  { %868 = vpow2.f32 %v474_v0  ;;  %v496_v8 = vmul.f32 1.442695, %v468_v4  ;;  %v498_v9 = vmul.f32 1.442695, %v469_v5  ;;  %v492_v10 = vmul.f32 1.442695, %v466_v6 }
 0x19f   :  { %v1142_v13 = vadd.f32 %v1089_v24, %v205_v7  ;;  %v494_v21 = vmul.f32 1.442695, %v467_v11  ;;  %v1145_v23 = vadd.f32 %v1091_v25, %v205_v7 }
 0x1a0   :  { %v855_v12 = vpop.eup %854  ;;  %870 = vpow2.f32 %v496_v8 }
 0x1a1   :  { %v857_v14 = vpop.eup %856  ;;  %v510_v15 = vadd.f32 1.0, %v855_v12  ;;  %872 = vpow2.f32 %v498_v9  ;;  %v464_v26 = vsub.f32 0.0, %v1142_v13  ;;  %v465_v40 = vsub.f32 0.0, %v1145_v23 }
 0x1a2   :  { %v859_v16 = vpop.eup %858  ;;  %v508_v17 = vadd.f32 1.0, %v857_v14  ;;  %874 = vpow2.f32 %v492_v10  ;;  %v226_v18 = vpop.permute.xlu1 %225 }
 0x1a3   :  { %v861_v19 = vpop.eup %860  ;;  %876 = vrcp.f32 %v510_v15  ;;  %v509_v20 = vadd.f32 1.0, %v859_v16  ;;  %v1149_v27 = vadd.f32 %v1094_v30, %v226_v18  ;;  %v1152_v32 = vadd.f32 %v1096_v31, %v226_v18 }
 0x1a4   :  { %878 = vrcp.f32 %v508_v17  ;;  %v511_v22 = vadd.f32 1.0, %v861_v19  ;;  %v488_v41 = vmul.f32 1.442695, %v464_v26  ;;  %v490_v46 = vmul.f32 1.442695, %v465_v40 }
 0x1a5   :  { %v863_v24 = vpop.eup %862  ;;  %880 = vrcp.f32 %v509_v20  ;;  %v470_v30 = vsub.f32 0.0, %v1149_v27  ;;  %v471_v44 = vsub.f32 0.0, %v1152_v32 }
 0x1a6   :  { %v865_v28 = vpop.eup %864  ;;  %882 = vrcp.f32 %v511_v22  ;;  %v506_v29 = vadd.f32 1.0, %v863_v24 }
 0x1a7   :  { %v867_v33 = vpop.eup %866  ;;  %v507_v34 = vadd.f32 1.0, %v865_v28  ;;  %884 = vpow2.f32 %v494_v21  ;;  %v500_v48 = vmul.f32 1.442695, %v470_v30  ;;  %v502_v54 = vmul.f32 1.442695, %v471_v44 }
 0x1a8   :  { %v869_v35 = vpop.eup %868  ;;  %886 = vrcp.f32 %v506_v29  ;;  %v504_v25 = vadd.f32 1.0, %v867_v33 }
 0x1a9   :  { %888 = vrcp.f32 %v507_v34  ;;  %v505_v42 = vadd.f32 1.0, %v869_v35 }
 0x1aa   :  { %v871_v43 = vpop.eup %870  ;;  %890 = vrcp.f32 %v504_v25 }
 0x1ab   :  { %v873_v45 = vpop.eup %872  ;;  %892 = vrcp.f32 %v505_v42  ;;  %v516_v63 = vadd.f32 1.0, %v871_v43 }
 0x1ac   :  { %v875_v31 = vpop.eup %874  ;;  %894 = vpow2.f32 %v488_v41 }
 0x1ad   :  { %v877_v47 = vpop.eup %876  ;;  %896 = vpow2.f32 %v490_v46  ;;  %v514_v15 = vadd.f32 1.0, %v875_v31 }
 0x1ae   :  { %v879_v49 = vpop.eup %878  ;;  %898 = vpow2.f32 %v500_v48  ;;  %v558_v62 = vmul.f32 %v877_v47, %v1101_v36  ;;  %v517_v36 = vadd.f32 1.0, %v873_v45 }
 0x1af   :  { %v881_v55 = vpop.eup %880  ;;  %900 = vpow2.f32 %v502_v54  ;;  %v556_v7 = vmul.f32 %v879_v49, %v1103_v37 }
 0x1b0   :  { %v883_v60 = vpop.eup %882  ;;  %v557_v11 = vmul.f32 %v881_v55, %v1105_v38  ;;  %902 = vrcp.f32 %v516_v63 }
 0x1b1   :  { %v885_v57 = vpop.eup %884  ;;  %v559_v4 = vmul.f32 %v883_v60, %v1107_v39 }
 0x1b2   :  { %v887_v59 = vpop.eup %886  ;;  %v515_v39 = vadd.f32 1.0, %v885_v57 }
 0x1b3   :  { %v889_v61 = vpop.eup %888  ;;  %v554_v56 = vmul.f32 %v887_v59, %v1114_v50 }
 0x1b4   :  { %v891_v0 = vpop.eup %890  ;;  %v555_v5 = vmul.f32 %v889_v61, %v1117_v51 }
 0x1b5   :  { %v893_v6 = vpop.eup %892  ;;  %v812_v8 = vpack.c.bf16 %v558_v62, %v554_v56  ;;  %v552_v9 = vmul.f32 %v891_v0, %v1120_v52 }
 0x1b6   :  { %v895_v10 = vpop.eup %894  ;;  %v553_v12 = vmul.f32 %v893_v6, %v1123_v53  ;;  %v810_v14 = vpack.c.bf16 %v559_v4, %v555_v5 }
 0x1b7   :  { %v804_v50 = vpack.c.bf16 %v556_v7, %v552_v9  ;;  %v512_v16 = vadd.f32 1.0, %v895_v10  ;;  %v897_v37 = vpop.eup %896 }
 0x1b8   :  { %v802_v17 = vpack.c.bf16 %v557_v11, %v553_v12  ;;  %811 = vmatprep.subr.bf16.mxu0 %v810_v14  ;;  %v899_v51 = vpop.eup %898  ;;  %v513_v52 = vadd.f32 1.0, %v897_v37 }
 0x1b9   :  { %904 = vrcp.f32 %v512_v16  ;;  %813 = vmatpush1.bf16.msra.mxu0 %v812_v8  ;;  %v901_v38 = vpop.eup %900  ;;  %v518_v53 = vadd.f32 1.0, %v899_v51 }
 0x1ba   :  { %906 = vrcp.f32 %v517_v36  ;;  %803 = vmatprep.subr.bf16.mxu1 %v802_v17  ;;  %v519_v18 = vadd.f32 1.0, %v901_v38  ;;  %v903_v19 = vpop.eup %902 }
 0x1bb   :  { %908 = vrcp.f32 %v514_v15  ;;  %805 = vmatpush1.bf16.msra.mxu1 %v804_v50  ;;  %v564_v22 = vmul.f32 %v903_v19, %v1129_v1 }
 0x1bc   :  { %910 = vrcp.f32 %v515_v39 }
 0x1bd   :  { %912 = vrcp.f32 %v513_v52 }
 0x1be   :  { %914 = vrcp.f32 %v518_v53 }
 0x1bf   :  { %916 = vrcp.f32 %v519_v18 }
 0x1c3   :  { %v905_v20 = vpop.eup %904 }
 0x1c4   :  { %v907_v21 = vpop.eup %906  ;;  %v560_v26 = vmul.f32 %v905_v20, %v1142_v13 }
 0x1c5   :  { %v909_v24 = vpop.eup %908  ;;  %v565_v35 = vmul.f32 %v907_v21, %v1131_v58  ;;  %v568_v58 = vld [vmem:[%s1190_s2] sm:$0xf]  ;;  %s940_s2 = scalar_lea.vmem %s737_s28, 256 }
 0x1c6   :  { %v911_v28 = vpop.eup %910  ;;  %v808_v29 = vpack.c.bf16 %v564_v22, %v560_v26  ;;  %v562_v41 = vmul.f32 %v909_v24, %v1133_v2  ;;  %v572_v2 = vpop.permute.xlu0 %571  ;;  %p941_p8 = scmp.ne.s32.totalorder %s737_s28, %s940_s2  ;;  %p946_p10 = scmp.lt.s32.totalorder %s940_s2, %s940_s2 }
 0x1c7   :  { %v913_v33 = vpop.eup %912  ;;  %v563_v30 = vmul.f32 %v911_v28, %v1135_v3 }
 0x1c8   :  { %v915_v34 = vpop.eup %914  ;;  %v561_v25 = vmul.f32 %v913_v33, %v1145_v23  ;;  %p947_p11 = por %p946_p10, %p945_p9 }
 0x1c9   :  { %v917_v40 = vpop.eup %916  ;;  %v566_v42 = vmul.f32 %v915_v34, %v1149_v27 }
 0x1ca   :  { %v567_v1 = vmul.f32 %v917_v40, %v1152_v32  ;;  %v806_v43 = vpack.c.bf16 %v565_v35, %v561_v25  ;;  %p948_p12 = pnand %p947_p11, %p941_p8 }
 0x1cb   :  { %v816_v13 = vpack.c.bf16 %v566_v42, %v562_v41 }
 0x1cc   :  { %807 = vmatprep.subr.bf16.mxu1 %v806_v43  ;;  %v814_v44 = vpack.c.bf16 %v567_v1, %v563_v30 }
 0x1cd   :  { %809 = vmatpush1.bf16.msra.mxu1 %v808_v29 }
 0x1ce   :  { %815 = vmatprep.subr.bf16.mxu0 %v814_v44 }
 0x1cf   :  { %817 = vmatpush1.bf16.msra.mxu0 %v816_v13 }
 0x1d0   :  { %762 = vmatmul.mubr.msk.f32.vlgmr.msra.gmra.mrb[8].mxu1 %vm574_vm6, %v568_v58 }
 0x1d2   :  { %763 = vmatmul.mubr.msk.f32.vlgmr.msra.gmra.mrb[12].mxu0 %vm574_vm6, %v568_v58 }
 0x2a3   :  { %v644_v23 = vpop.f32.mrb[8].mxu1 }
 0x2a4   :  { %v645_v27 = vadd.f32 %v644_v23, %v572_v2  ;;  %v646_v3 = vpop.f32.mrb[9].mxu1 }
 0x2a5   :  { %v715_v45 = vpop.f32.mrb[12].mxu0  ;;  %v647_v32 = vadd.f32 %v646_v3, %v572_v2 }
 0x2a6   :  { %v716_v31 = vadd.f32 %v715_v45, %v572_v2  ;;  %v717_v46 = vpop.f32.mrb[13].mxu0 }
 0x2a7   :  { %v724_v47 = vcombine.low %v645_v27, %v647_v32  ;;  %v718_v48 = vadd.f32 %v717_v46, %v572_v2 }
 0x2a9   :  { %728 = vst [vmem:[#allocation5] sm:$0xff] %v724_v47  ;;  %v725_v49 = vcombine.low %v716_v31, %v718_v48 }
 0x2ab   :  { %729 = vst [vmem:[#allocation5 + $0x8] sm:$0xff] %v725_v49 }
 0x2ac   :  { %951 = shalt.err (!%p948_p12)
}
 0x2ad   :  { %s952_s6 = scalar_lea.hbm %s1193_s5, 256 }
 0x2ae   :  { %p953_p13 = scmp.ne.s32.totalorder %s1193_s5, %s952_s6  ;;  %p956_p0 = scmp.lt.u32.totalorder %s952_s6, %s1193_s5 }
 0x2b0   :  { %p958_p1 = pnand %p956_p0, %p953_p13 }
 0x2b2   :  { %961 = shalt.err (!%p958_p1)
}
 0x2b3   :  { %739 = dma.vmem_to_hbm [thread:$0]  %s737_s28, 256, %s1193_s5, [#allocation4]  }
 0x2b4   :  { %964 = dma.done.wait [#allocation4], 256  }
 0x2b5   :  { %965 = vsyncadd [#allocation4], 4294967040 }
 0x2b6   :  { %743 = vsyncpa [#allocation3], 1 }
 0x2b7   :  { %744 = vsyncpa [#allocation4], 1 }

</bundles_post_ra>
